<compile_context>
chip_gen: v7x
topology: tpu7x:2x2x1
jax: 0.10.0
libtpu: 0.0.40
codegen_flags: <defaults>
</compile_context>

<pallas_src>
import jax
import jax.numpy as jnp
from jax.experimental import pallas as pl
from jax.experimental.pallas import tpu as pltpu


# Per-grid-step lane budget for the batch axis (multiple of 128).
# (2, 262144) f32 input block = 2 MiB, (1, 262144) f32 output = 1 MiB.
_MAX_TILE_B = 256 * 1024
_LANES = 128


def perceptron_kernel(params_ref, x_ref, o_ref):
    # params_ref: (3,) f32 in SMEM  = [w0, w1, b]   (scalar prefetch)
    # x_ref:      (2, tile_b) VMEM  — feature-major, lane-dense batch
    # o_ref:      (1, tile_b) VMEM
    w0 = params_ref[0]
    w1 = params_ref[1]
    b = params_ref[2]
    x = x_ref[...].astype(jnp.float32)           # upcast in-kernel (bf16-on-the-wire OK)
    z = w0 * x[0:1, :] + w1 * x[1:2, :] + b      # VPU multiply-add, full lanes
    o_ref[...] = jnp.tanh(z).astype(o_ref.dtype)  # EUP tanh


def perceptron_forward(x, weight, bias):
    """x: (B, 2), weight: (1, 2) (PyTorch layout), bias: (1,) -> (B, 1) f32."""
    B, in_f = x.shape
    out_f = weight.shape[0]
    assert in_f == 2 and out_f == 1, "kernel specialized for Linear(2, 1)"

    # Single packed scalar operand for SMEM: [w0, w1, b].
    params = jnp.concatenate(
        [weight.reshape(-1), bias.reshape(-1)]
    ).astype(jnp.float32)

    # Lane-dense layout: feature-major (2, B), batch padded to lane multiples.
    bp_min = ((B + _LANES - 1) // _LANES) * _LANES
    tile_b = min(_MAX_TILE_B, bp_min)
    bp = ((B + tile_b - 1) // tile_b) * tile_b
    x_t = jnp.pad(jnp.transpose(x), ((0, 0), (0, bp - B)))  # (2, bp), native dtype

    out = pl.pallas_call(
        perceptron_kernel,
        out_shape=jax.ShapeDtypeStruct((1, bp), jnp.float32),
        grid_spec=pltpu.PrefetchScalarGridSpec(
            num_scalar_prefetch=1,                     # params -> SMEM
            grid=(bp // tile_b,),
            in_specs=[pl.BlockSpec((2, tile_b), lambda i, p: (0, i))],
            out_specs=pl.BlockSpec((1, tile_b), lambda i, p: (0, i)),
        ),
        compiler_params=pltpu.CompilerParams(
            dimension_semantics=("parallel",),         # v7x: 2 TCs split the batch
        ),
    )(params, x_t)

    return out[0, :B].reshape(B, 1)


if __name__ == "__main__":
    # Same training data as the reference script.
    X_train = jnp.array(
        [[1.0, 1.0], [1.0, -1.0], [-1.0, 1.0], [-1.0, -1.0]], dtype=jnp.float32
    )

    # Deterministic init of Linear(2, 1) parameters (PyTorch uses U(-1/sqrt(2), 1/sqrt(2))).
    key = jax.random.PRNGKey(0)
    kw, kb, kx = jax.random.split(key, 3)
    bound = 1.0 / jnp.sqrt(2.0)
    weight = jax.random.uniform(kw, (1, 2), jnp.float32, minval=-bound, maxval=bound)
    bias = jax.random.uniform(kb, (1,), jnp.float32, minval=-bound, maxval=bound)

    # Toy forward (the literal spec).
    y = perceptron_forward(X_train, weight, bias)
    jax.block_until_ready(y)
    y_ref = jnp.tanh(X_train @ weight.T + bias)
    assert y.shape == (4, 1)
    assert jnp.allclose(y, y_ref, atol=1e-5), (y, y_ref)

    # Secondary check: non-lane-aligned batch exercises the padding/slicing path.
    X_big = jax.random.normal(kx, (37, 2), jnp.float32)
    y_big = perceptron_forward(X_big, weight, bias)
    jax.block_until_ready(y_big)
    y_big_ref = jnp.tanh(X_big @ weight.T + bias)
    assert y_big.shape == (37, 1)
    assert jnp.allclose(y_big, y_big_ref, atol=1e-5)

    print("KERNEL_OK")
</pallas_src>

<mosaic_0001>
module attributes {stable_mosaic.version = 11 : i64} {
  func.func @perceptron_kernel(%arg0: i32, %arg1: memref<3xf32, #tpu.memory_space<smem>>, %arg2: memref<2x128xf32, #tpu.memory_space<vmem>>, %arg3: memref<1x128xf32, #tpu.memory_space<vmem>>) attributes {dimension_semantics = [#tpu.dimension_semantics<parallel>], iteration_bounds = array<i64: 1>, scalar_prefetch = 1 : i64, scratch_operands = 0 : i64, tpu.core_type = #tpu.core_type<tc>, window_params = [{transform_indices = @transform_0, window_bounds = array<i64: 2, 128>}, {transform_indices = @transform_1, window_bounds = array<i64: 1, 128>}]} {
    %c0 = arith.constant 0 : index
    %0 = memref.load %arg1[%c0] : memref<3xf32, #tpu.memory_space<smem>>
    %c1 = arith.constant 1 : index
    %1 = memref.load %arg1[%c1] : memref<3xf32, #tpu.memory_space<smem>>
    %c2 = arith.constant 2 : index
    %2 = memref.load %arg1[%c2] : memref<3xf32, #tpu.memory_space<smem>>
    %c0_0 = arith.constant 0 : index
    %c0_1 = arith.constant 0 : index
    %3 = vector.load %arg2[%c0_0, %c0_1] : memref<2x128xf32, #tpu.memory_space<vmem>>, vector<2x128xf32>
    %4 = vector.extract_strided_slice %3 {offsets = [0, 0], sizes = [1, 128], strides = [1, 1]} : vector<2x128xf32> to vector<1x128xf32>
    %5 = vector.broadcast %0 : f32 to vector<1x128xf32>
    %6 = arith.mulf %5, %4 : vector<1x128xf32>
    %7 = vector.extract_strided_slice %3 {offsets = [1, 0], sizes = [1, 128], strides = [1, 1]} : vector<2x128xf32> to vector<1x128xf32>
    %8 = vector.broadcast %1 : f32 to vector<1x128xf32>
    %9 = arith.mulf %8, %7 : vector<1x128xf32>
    %10 = arith.addf %6, %9 : vector<1x128xf32>
    %11 = vector.broadcast %2 : f32 to vector<1x128xf32>
    %12 = arith.addf %10, %11 : vector<1x128xf32>
    %13 = math.tanh %12 : vector<1x128xf32>
    %c0_2 = arith.constant 0 : index
    %c0_3 = arith.constant 0 : index
    %14 = vector.load %arg3[%c0_2, %c0_3] : memref<1x128xf32, #tpu.memory_space<vmem>>, vector<1x128xf32>
    tpu.vector_store %arg3[%c0_2, %c0_3], %13 {strides = array<i32>} : memref<1x128xf32, #tpu.memory_space<vmem>>, vector<1x128xf32>,
    return
  }
  func.func @transform_0(%arg0: i32, %arg1: memref<3xf32, #tpu.memory_space<smem>>) -> (i32, i32) {
    %c0_i32 = arith.constant 0 : i32
    %c0_i32_0 = arith.constant 0 : i32
    return %c0_i32, %arg0 : i32, i32
  }
  func.func @transform_1(%arg0: i32, %arg1: memref<3xf32, #tpu.memory_space<smem>>) -> (i32, i32) {
    %c0_i32 = arith.constant 0 : i32
    %c0_i32_0 = arith.constant 0 : i32
    return %c0_i32, %arg0 : i32, i32
  }
}

</mosaic_0001>

<bundles_post_ra>
// kernel: tpu_custom_call.1
= control target key start
LH: loop header
LB: loop body
LE: loop exit
PB: predicated region body
PF: predicated region fallthrough
CT: control target
= control target key end

     0   :  { %s130_s0 = inlined_call_operand.hbm [shape: f32[3], index: 0, kind: input, shape index: {}]   ;;  %s131_s1 = inlined_call_operand.vmem [shape: f32[2,128], index: 1, kind: input, shape index: {}]   ;;  %s132_s2 = inlined_call_operand.hbm [shape: f32[1,128], index: 2, kind: output, shape index: {}]  }
   0x1   :  { %s50_s11 = scalar_lea.hbm %s130_s0, 16 }
   0x2   :  { %p51_p0 = scmp.ne.s32.totalorder %s130_s0, %s50_s11  ;;  %p54_p1 = scmp.lt.u32.totalorder %s50_s11, %s130_s0 }
   0x4   :  { %p56_p2 = pnand %p54_p1, %p51_p0 }
   0x6   :  { %59 = shalt.err (!%p56_p2)  }
   0x7   :  { %s86_s16 = smov [#allocation3]  }
   0x8   :  { %8 = dma.hbm_to_smem %s130_s0, 16, %s86_s16, [#allocation2] }
   0x9   :  { %82 = dma.done.wait [#allocation2], 16 }
   0xa   :  { %83 = vsyncadd [#allocation2], 4294967280 }
   0xb   :  { %10 = sfence }
   0xc   :  { %s14_s19 = sld [smem:[#allocation3]]  ;;  %s44_s20 = sld [smem:[#allocation3 + $0x1]] }
   0xd   :  { %11 = vsyncpa [#allocation5], 0  ;;  %s45_s21 = sld [smem:[#allocation3 + $0x2]]  ;;  %v17_v0 = vld [vmem:[%s131_s1] sm:$0x3]  ;;  %s87_s0 = smov [#allocation4]  }
   0xe   :  { %s36_s24 = sshll.u32 %s87_s0, 4  ;;  %s37_s24 = int_to_ptr.vmem [resolvable:$true] %s36_s24 }
   0xf   :  { %s60_s25 = scalar_lea.vmem %s37_s24, 16  ;;  %s64_s26 = scalar_lea.vmem %s37_s24, 32 }
  0x10   :  { %p61_p3 = scmp.ne.s32.totalorder %s37_s24, %s60_s25  ;;  %p65_p4 = scmp.lt.s32.totalorder %s37_s24, %s37_s24 }
  0x11   :  { %p66_p5 = scmp.lt.s32.totalorder %s64_s26, %s60_s25 }
  0x12   :  { %v18_v1 = vstv %s14_s19  ;;  %v20_v2 = vstv %s44_s20 }
  0x13   :  { %v19_v3 = vmul.f32 %v18_v1, %v17_v0  ;;  %v21_v4 = vmul.f32 %v20_v2, %v17_v0  ;;  %v26_v6 = vstv %s45_s21  ;;  %p67_p6 = por %p66_p5, %p65_p4 }
  0x15   :  { %v23_v5 = vrot.slane %v21_v4, 1  ;;  %p68_p7 = pnand %p67_p6, %p61_p3 }
  0x17   :  { %v25_v7 = vadd.f32 %v23_v5, %v19_v3 }
  0x19   :  { %v27_v8 = vadd.f32 %v26_v6, %v25_v7 }
  0x1b   :  { %48 = vtanh.f32 %v27_v8 }
  0x25   :  { %v49_v9 = vpop.eup %48 }
  0x26   :  { %29 = vst [vmem:[#allocation4] sm:$0x1] %v49_v9 }
  0x27   :  { %71 = shalt.err (!%p68_p7)
}
  0x28   :  { %s72_s28 = scalar_lea.hbm %s132_s2, 16 }
  0x29   :  { %p73_p8 = scmp.ne.s32.totalorder %s132_s2, %s72_s28  ;;  %p76_p9 = scmp.lt.u32.totalorder %s72_s28, %s132_s2 }
  0x2b   :  { %p78_p10 = pnand %p76_p9, %p73_p8 }
  0x2d   :  { %81 = shalt.err (!%p78_p10)
}
  0x2e   :  { %39 = dma.vmem_to_hbm [thread:$0]  %s37_s24, 16, %s132_s2, [#allocation5]  }
  0x2f   :  { %84 = dma.done.wait [#allocation5], 16  }
  0x30   :  { %85 = vsyncadd [#allocation5], 4294967280 }
  0x31   :  { %43 = vsyncpa [#allocation5], 1 }

</bundles_post_ra>
